<compile_context>
chip_gen: v5e
topology: v5e:2x2
jax: 0.10.0
libtpu: 0.0.40
codegen_flags: <defaults>
</compile_context>

<pallas_src>
import jax
import jax.numpy as jnp
from jax.experimental import pallas as pl
from jax.experimental.pallas import tpu as pltpu


# ---------------------------------------------------------------------------
# Kernel bodies
# ---------------------------------------------------------------------------

def _flat_kernel(drug_ref, patient_ref, wbig_ref, bgbig_ref, wabig_ref,
                 sexp_ref, gred_ref, out_ref):
    """Lane-dense path: sequence folded into the lane dim (last dim = L*F / L*A)."""
    drug = drug_ref[...].astype(jnp.float32)        # (tb, L*F)  lane-dense
    patient = patient_ref[...].astype(jnp.float32)  # (tb, L*A)  lane-dense

    # Gate: block-diagonal weight turns L small (F->A) matmuls into one dense
    # (tb, L*F) @ (L*F, L*A) MXU matmul with >=128-wide contraction & output.
    gate_pre = jnp.dot(drug, wbig_ref[...], preferred_element_type=jnp.float32)
    gate_pre = gate_pre + bgbig_ref[...]
    gate = 0.5 * (jnp.tanh(0.5 * gate_pre) + 1.0)   # sigmoid via a single EUP tanh

    c = gate * patient                              # (tb, L*A) lane-dense VPU

    # Scores s[b, l] = tanh(sum_a c[b, l, a] * wa[a]) via a block-diagonal matmul.
    s = jnp.tanh(jnp.dot(c, wabig_ref[...], preferred_element_type=jnp.float32))  # (tb, L)

    # Numerically-stable softmax over the sequence axis (tiny (tb, L); exact divide).
    m = jnp.max(s, axis=-1, keepdims=True)
    e = jnp.exp(s - m)
    attn = e / jnp.sum(e, axis=-1, keepdims=True)   # (tb, L)

    # Broadcast attn across the attention dim and pool over L — both on the MXU.
    attn_flat = jnp.dot(attn, sexp_ref[...], preferred_element_type=jnp.float32)  # (tb, L*A)
    rep = jnp.dot(patient * attn_flat, gred_ref[...],
                  preferred_element_type=jnp.float32)                              # (tb, A)

    out_ref[...] = rep.astype(out_ref.dtype)        # full-block store


def _generic_kernel(drug_ref, patient_ref, wg_ref, bg_ref, wa_ref, out_ref):
    """Fallback path for large L*F / L*A (keeps the (tb, L, .) layout)."""
    tb, L, F = drug_ref.shape
    A = patient_ref.shape[-1]

    drug2d = drug_ref[...].reshape(tb * L, F).astype(jnp.float32)
    gate_pre = jnp.dot(drug2d, wg_ref[...].astype(jnp.float32),
                       preferred_element_type=jnp.float32)
    gate_pre = gate_pre + bg_ref[...].astype(jnp.float32)
    gate = (0.5 * (jnp.tanh(0.5 * gate_pre) + 1.0)).reshape(tb, L, A)

    patient = patient_ref[...].astype(jnp.float32)                       # (tb, L, A)
    c = gate * patient

    wa = wa_ref[...].astype(jnp.float32)                                 # (1, A)
    scores = jnp.tanh(jnp.sum(c * wa, axis=-1, keepdims=True))           # (tb, L, 1)

    m = jnp.max(scores, axis=1, keepdims=True)
    e = jnp.exp(scores - m)
    attn = e / jnp.sum(e, axis=1, keepdims=True)                         # (tb, L, 1)

    rep = jnp.sum(patient * attn, axis=1)                                # (tb, A)
    out_ref[...] = rep.astype(out_ref.dtype)


# ---------------------------------------------------------------------------
# Wrapper
# ---------------------------------------------------------------------------

def _choose_batch_tile(B, row_bytes, fixed_bytes, *, cap=1024, min_steps=4,
                       vmem_budget=12 << 20):
    """Batch rows per grid step: fit a ~12 MiB VMEM budget (v5e default scoped
    VMEM is 16 MiB; v6e/v7x 32 MiB), keep >= min_steps grid steps so the
    auto-pipeline / megacore have work, and keep tb a multiple of 8 sublanes."""
    if B <= 8:
        return int(B)                    # single full block, no raggedness
    budget = max(vmem_budget - fixed_bytes, 1 << 20)
    tb = min(cap, budget // max(row_bytes, 1), pl.cdiv(B, min_steps))
    tb = max(8, (int(tb) // 8) * 8)
    return int(tb)


def affective_attention(drug_vec, patient_vec, wg, bg, wa, *,
                        batch_tile=1024, path="auto"):
    """drug_vec: (B, L, F); patient_vec: (B, L, A); wg: (F, A); bg: (1, A); wa: (1, A)."""
    B, L, F = drug_vec.shape
    A = patient_vec.shape[-1]

    use_flat = (path == "flat") or (path == "auto" and L * F <= 1024 and L * A <= 1024)
    parallel = pltpu.CompilerParams(dimension_semantics=("parallel",))

    if use_flat:
        LF, LA = L * F, L * A
        f32 = jnp.float32
        eye_l = jnp.eye(L, dtype=f32)
        wg32, bg32, wa32 = wg.astype(f32), bg.astype(f32), wa.astype(f32)

        # One-time tiny block-diagonal operators so every big step is lane-dense.
        w_big = jnp.einsum("ij,fa->ifja", eye_l, wg32).reshape(LF, LA)     # gate weight
        bg_big = jnp.tile(bg32, (1, L))                                    # (1, LA)
        wa_big = jnp.einsum("ij,a->iaj", eye_l, wa32[0]).reshape(LA, L)    # score weight
        s_expand = jnp.einsum("ij,a->ija", eye_l,
                              jnp.ones((A,), f32)).reshape(L, LA)          # attn broadcast
        g_reduce = jnp.tile(jnp.eye(A, dtype=f32), (L, 1))                 # (LA, A) pool

        # Trailing-dim reshapes: no copy, no transpose.
        drug_flat = drug_vec.reshape(B, LF)
        patient_flat = patient_vec.reshape(B, LA)

        itemsize = max(drug_vec.dtype.itemsize, patient_vec.dtype.itemsize)
        row_bytes = 2 * itemsize * (LF + LA) + 4 * 4 * LA      # 2x-buffered in + f32 temps
        fixed_bytes = 4 * (LF * LA + LA * L + L * LA + LA * A + 2 * LA)
        tb = _choose_batch_tile(B, row_bytes, fixed_bytes, cap=batch_tile)

        return pl.pallas_call(
            _flat_kernel,
            out_shape=jax.ShapeDtypeStruct((B, A), jnp.float32),
            grid=(pl.cdiv(B, tb),),
            in_specs=[
                pl.BlockSpec((tb, LF), lambda b: (b, 0)),
                pl.BlockSpec((tb, LA), lambda b: (b, 0)),
                pl.BlockSpec((LF, LA), lambda b: (0, 0)),
                pl.BlockSpec((1, LA), lambda b: (0, 0)),
                pl.BlockSpec((LA, L), lambda b: (0, 0)),
                pl.BlockSpec((L, LA), lambda b: (0, 0)),
                pl.BlockSpec((LA, A), lambda b: (0, 0)),
            ],
            out_specs=pl.BlockSpec((tb, A), lambda b: (b, 0)),
            compiler_params=parallel,
        )(drug_flat, patient_flat, w_big, bg_big, wa_big, s_expand, g_reduce)

    # Generic path (large L*F / L*A): intermediates lane-pad to 128 in VMEM.
    lane_f, lane_a = max(F, 128), max(A, 128)
    itemsize = max(drug_vec.dtype.itemsize, patient_vec.dtype.itemsize)
    row_bytes = 2 * itemsize * L * (lane_f + lane_a) + 5 * 4 * L * lane_a
    fixed_bytes = 4 * (F * lane_a + 2 * lane_a)
    tb = _choose_batch_tile(B, row_bytes, fixed_bytes, cap=batch_tile)

    return pl.pallas_call(
        _generic_kernel,
        out_shape=jax.ShapeDtypeStruct((B, A), jnp.float32),
        grid=(pl.cdiv(B, tb),),
        in_specs=[
            pl.BlockSpec((tb, L, F), lambda b: (b, 0, 0)),
            pl.BlockSpec((tb, L, A), lambda b: (b, 0, 0)),
            pl.BlockSpec((F, A), lambda b: (0, 0)),
            pl.BlockSpec((1, A), lambda b: (0, 0)),
            pl.BlockSpec((1, A), lambda b: (0, 0)),
        ],
        out_specs=pl.BlockSpec((tb, A), lambda b: (b, 0)),
        compiler_params=parallel,
    )(drug_vec, patient_vec, wg, bg, wa)


def reference(drug_vec, patient_vec, wg, bg, wa):
    gate = jax.nn.sigmoid(jnp.einsum("blf,fa->bla", drug_vec, wg) + bg)
    c = gate * patient_vec
    scores = jnp.tanh(jnp.einsum("bla,a->bl", c, wa[0]))
    attn = jax.nn.softmax(scores, axis=-1)
    return jnp.sum(patient_vec * attn[..., None], axis=1)


if __name__ == "__main__":
    B, L, F, A = 2, 8, 32, 32   # batch, seq len, feature_size, attention_size

    key = jax.random.PRNGKey(0)
    k_drug, k_pat, k_wg, k_bg, k_wa = jax.random.split(key, 5)

    drug_vec = jax.random.normal(k_drug, (B, L, F), dtype=jnp.float32)
    patient_vec = jax.random.normal(k_pat, (B, L, A), dtype=jnp.float32)

    # nn.Linear(F, A): weight stored transposed as (F, A); bias kept as (1, A).
    bound_g = 1.0 / jnp.sqrt(F)
    wg = jax.random.uniform(k_wg, (F, A), minval=-bound_g, maxval=bound_g, dtype=jnp.float32)
    bg = jax.random.uniform(k_bg, (1, A), minval=-bound_g, maxval=bound_g, dtype=jnp.float32)
    # SelfAttention attention_weights ~ U(-0.005, 0.005), shape (A,), kept as (1, A).
    wa = jax.random.uniform(k_wa, (1, A), minval=-0.005, maxval=0.005, dtype=jnp.float32)

    ref = reference(drug_vec, patient_vec, wg, bg, wa)

    # Lane-dense (flat) path — the default for these shapes.
    out = jax.block_until_ready(affective_attention(drug_vec, patient_vec, wg, bg, wa))
    assert out.shape == (B, A)
    assert jnp.allclose(out, ref, atol=1e-4, rtol=1e-4), "flat path mismatch vs reference"

    # Generic fallback path (exercised to keep both code paths verified).
    out_gen = jax.block_until_ready(
        affective_attention(drug_vec, patient_vec, wg, bg, wa, path="generic"))
    assert jnp.allclose(out_gen, ref, atol=1e-4, rtol=1e-4), "generic path mismatch vs reference"

    print("KERNEL_OK")
</pallas_src>

<mosaic_0001>
module attributes {stable_mosaic.version = 11 : i64} {
  func.func @_flat_kernel(%arg0: i32, %arg1: memref<2x256xf32, #tpu.memory_space<vmem>>, %arg2: memref<2x256xf32, #tpu.memory_space<vmem>>, %arg3: memref<256x256xf32, #tpu.memory_space<vmem>>, %arg4: memref<1x256xf32, #tpu.memory_space<vmem>>, %arg5: memref<256x8xf32, #tpu.memory_space<vmem>>, %arg6: memref<8x256xf32, #tpu.memory_space<vmem>>, %arg7: memref<256x32xf32, #tpu.memory_space<vmem>>, %arg8: memref<2x32xf32, #tpu.memory_space<vmem>>) attributes {dimension_semantics = [#tpu.dimension_semantics<parallel>], iteration_bounds = array<i64: 1>, scalar_prefetch = 0 : i64, scratch_operands = 0 : i64, tpu.core_type = #tpu.core_type<tc>, window_params = [{transform_indices = @transform_0, window_bounds = array<i64: 2, 256>}, {transform_indices = @transform_1, window_bounds = array<i64: 2, 256>}, {pipeline_mode = #tpu.pipeline_mode<synchronous>, transform_indices = @transform_2, window_bounds = array<i64: 256, 256>}, {pipeline_mode = #tpu.pipeline_mode<synchronous>, transform_indices = @transform_3, window_bounds = array<i64: 1, 256>}, {pipeline_mode = #tpu.pipeline_mode<synchronous>, transform_indices = @transform_4, window_bounds = array<i64: 256, 8>}, {pipeline_mode = #tpu.pipeline_mode<synchronous>, transform_indices = @transform_5, window_bounds = array<i64: 8, 256>}, {pipeline_mode = #tpu.pipeline_mode<synchronous>, transform_indices = @transform_6, window_bounds = array<i64: 256, 32>}, {transform_indices = @transform_7, window_bounds = array<i64: 2, 32>}]} {
    %c0 = arith.constant 0 : index
    %c0_0 = arith.constant 0 : index
    %0 = vector.load %arg1[%c0, %c0_0] : memref<2x256xf32, #tpu.memory_space<vmem>>, vector<2x256xf32>
    %c0_1 = arith.constant 0 : index
    %c0_2 = arith.constant 0 : index
    %1 = vector.load %arg2[%c0_1, %c0_2] : memref<2x256xf32, #tpu.memory_space<vmem>>, vector<2x256xf32>
    %c0_3 = arith.constant 0 : index
    %c0_4 = arith.constant 0 : index
    %2 = vector.load %arg3[%c0_3, %c0_4] : memref<256x256xf32, #tpu.memory_space<vmem>>, vector<256x256xf32>
    %cst = arith.constant dense<0.000000e+00> : vector<2x256xf32>
    %3 = tpu.matmul %0, %2, %cst {dimension_numbers = #tpu.dot_dimension_numbers<[1], [0], [0], [1], [0, 0, 1, 1], [], []>} : vector<2x256xf32>, vector<256x256xf32>, vector<2x256xf32> -> vector<2x256xf32>
    %c0_5 = arith.constant 0 : index
    %c0_6 = arith.constant 0 : index
    %4 = vector.load %arg4[%c0_5, %c0_6] : memref<1x256xf32, #tpu.memory_space<vmem>>, vector<1x256xf32>
    %5 = vector.broadcast %4 : vector<1x256xf32> to vector<2x256xf32>
    %6 = arith.addf %3, %5 : vector<2x256xf32>
    %cst_7 = arith.constant 5.000000e-01 : f32
    %7 = vector.broadcast %cst_7 : f32 to vector<2x256xf32>
    %8 = arith.mulf %7, %6 : vector<2x256xf32>
    %9 = math.tanh %8 : vector<2x256xf32>
    %cst_8 = arith.constant 1.000000e+00 : f32
    %10 = vector.broadcast %cst_8 : f32 to vector<2x256xf32>
    %11 = arith.addf %9, %10 : vector<2x256xf32>
    %cst_9 = arith.constant 5.000000e-01 : f32
    %12 = vector.broadcast %cst_9 : f32 to vector<2x256xf32>
    %13 = arith.mulf %12, %11 : vector<2x256xf32>
    %14 = arith.mulf %13, %1 : vector<2x256xf32>
    %c0_10 = arith.constant 0 : index
    %c0_11 = arith.constant 0 : index
    %15 = vector.load %arg5[%c0_10, %c0_11] : memref<256x8xf32, #tpu.memory_space<vmem>>, vector<256x8xf32>
    %cst_12 = arith.constant dense<0.000000e+00> : vector<2x8xf32>
    %16 = tpu.matmul %14, %15, %cst_12 {dimension_numbers = #tpu.dot_dimension_numbers<[1], [0], [0], [1], [0, 0, 1, 1], [], []>} : vector<2x256xf32>, vector<256x8xf32>, vector<2x8xf32> -> vector<2x8xf32>
    %17 = math.tanh %16 : vector<2x8xf32>
    %cst_13 = arith.constant dense<0xFF800000> : vector<2xf32>
    %18 = vector.multi_reduction <maximumf>, %17, %cst_13 [1] : vector<2x8xf32> to vector<2xf32>
    %19 = vector.shape_cast %18 : vector<2xf32> to vector<2x1xf32>
    %20 = vector.broadcast %19 : vector<2x1xf32> to vector<2x8xf32>
    %21 = arith.subf %17, %20 : vector<2x8xf32>
    %22 = math.exp %21 : vector<2x8xf32>
    %cst_14 = arith.constant dense<0.000000e+00> : vector<2xf32>
    %23 = vector.multi_reduction <add>, %22, %cst_14 [1] : vector<2x8xf32> to vector<2xf32>
    %24 = vector.shape_cast %23 : vector<2xf32> to vector<2x1xf32>
    %25 = vector.broadcast %24 : vector<2x1xf32> to vector<2x8xf32>
    %26 = arith.divf %22, %25 : vector<2x8xf32>
    %c0_15 = arith.constant 0 : index
    %c0_16 = arith.constant 0 : index
    %27 = vector.load %arg6[%c0_15, %c0_16] : memref<8x256xf32, #tpu.memory_space<vmem>>, vector<8x256xf32>
    %cst_17 = arith.constant dense<0.000000e+00> : vector<2x256xf32>
    %28 = tpu.matmul %26, %27, %cst_17 {dimension_numbers = #tpu.dot_dimension_numbers<[1], [0], [0], [1], [0, 0, 1, 1], [], []>} : vector<2x8xf32>, vector<8x256xf32>, vector<2x256xf32> -> vector<2x256xf32>
    %29 = arith.mulf %1, %28 : vector<2x256xf32>
    %c0_18 = arith.constant 0 : index
    %c0_19 = arith.constant 0 : index
    %30 = vector.load %arg7[%c0_18, %c0_19] : memref<256x32xf32, #tpu.memory_space<vmem>>, vector<256x32xf32>
    %cst_20 = arith.constant dense<0.000000e+00> : vector<2x32xf32>
    %31 = tpu.matmul %29, %30, %cst_20 {dimension_numbers = #tpu.dot_dimension_numbers<[1], [0], [0], [1], [0, 0, 1, 1], [], []>} : vector<2x256xf32>, vector<256x32xf32>, vector<2x32xf32> -> vector<2x32xf32>
    %c0_21 = arith.constant 0 : index
    %c0_22 = arith.constant 0 : index
    %32 = vector.load %arg8[%c0_21, %c0_22] : memref<2x32xf32, #tpu.memory_space<vmem>>, vector<2x32xf32>
    tpu.vector_store %arg8[%c0_21, %c0_22], %31 {strides = array<i32>} : memref<2x32xf32, #tpu.memory_space<vmem>>, vector<2x32xf32>,
    return
  }
  func.func @transform_0(%arg0: i32) -> (i32, i32) {
    %c0_i32 = arith.constant 0 : i32
    %c0_i32_0 = arith.constant 0 : i32
    return %arg0, %c0_i32 : i32, i32
  }
  func.func @transform_1(%arg0: i32) -> (i32, i32) {
    %c0_i32 = arith.constant 0 : i32
    %c0_i32_0 = arith.constant 0 : i32
    return %arg0, %c0_i32 : i32, i32
  }
  func.func @transform_2(%arg0: i32) -> (i32, i32) {
    %c0_i32 = arith.constant 0 : i32
    %c0_i32_0 = arith.constant 0 : i32
    %c0_i32_1 = arith.constant 0 : i32
    return %c0_i32, %c0_i32_0 : i32, i32
  }
  func.func @transform_3(%arg0: i32) -> (i32, i32) {
    %c0_i32 = arith.constant 0 : i32
    %c0_i32_0 = arith.constant 0 : i32
    %c0_i32_1 = arith.constant 0 : i32
    return %c0_i32, %c0_i32_0 : i32, i32
  }
  func.func @transform_4(%arg0: i32) -> (i32, i32) {
    %c0_i32 = arith.constant 0 : i32
    %c0_i32_0 = arith.constant 0 : i32
    %c0_i32_1 = arith.constant 0 : i32
    return %c0_i32, %c0_i32_0 : i32, i32
  }
  func.func @transform_5(%arg0: i32) -> (i32, i32) {
    %c0_i32 = arith.constant 0 : i32
    %c0_i32_0 = arith.constant 0 : i32
    %c0_i32_1 = arith.constant 0 : i32
    return %c0_i32, %c0_i32_0 : i32, i32
  }
  func.func @transform_6(%arg0: i32) -> (i32, i32) {
    %c0_i32 = arith.constant 0 : i32
    %c0_i32_0 = arith.constant 0 : i32
    %c0_i32_1 = arith.constant 0 : i32
    return %c0_i32, %c0_i32_0 : i32, i32
  }
  func.func @transform_7(%arg0: i32) -> (i32, i32) {
    %c0_i32 = arith.constant 0 : i32
    %c0_i32_0 = arith.constant 0 : i32
    return %arg0, %c0_i32 : i32, i32
  }
}

</mosaic_0001>

<bundles_post_ra>
// kernel: tpu_custom_call.1
= control target key start
LH: loop header
LB: loop body
LE: loop exit
PB: predicated region body
PF: predicated region fallthrough
CT: control target
= control target key end

     0   :  { %12 = vsyncpa [#allocation3], 0  ;;  %s1059_s0 = inlined_call_operand.hbm [shape: f32[2,256], index: 0, kind: input, shape index: {}]   ;;  %s1060_s1 = inlined_call_operand.hbm [shape: f32[2,256], index: 1, kind: input, shape index: {}]   ;;  %s1061_s2 = inlined_call_operand.vmem [shape: f32[256,256], index: 2, kind: input, shape index: {}]   ;;  %s1062_s3 = inlined_call_operand.hbm [shape: f32[1,256], index: 3, kind: input, shape index: {}]   ;;  %s1063_s4 = inlined_call_operand.vmem [shape: f32[256,8], index: 4, kind: input, shape index: {}]   ;;  %s1064_s5 = inlined_call_operand.vmem [shape: f32[8,256], index: 5, kind: input, shape index: {}]   ;;  %s1065_s6 = inlined_call_operand.vmem [shape: f32[256,32], index: 6, kind: input, shape index: {}]   ;;  %s1066_s7 = inlined_call_operand.hbm [shape: f32[2,32], index: 7, kind: output, shape index: {}]  }
   0x1   :  { %13 = vsyncpa [#allocation6], 0  ;;  %s31_s26 = sshll.u32 %s1060_s1, 4  ;;  %s32_s26 = int_to_ptr.hbm [resolvable:$true] %s31_s26 }
   0x2   :  { %14 = vsyncpa [#allocation4], 0  ;;  %s609_s27 = smov [#allocation5]   ;;  %s20_s8 = sshll.u32 %s1059_s0, 4  ;;  %s21_s8 = int_to_ptr.hbm [resolvable:$true] %s20_s8 }
   0x3   :  { %s33_s28 = sshll.u32 %s609_s27, 4  ;;  %s610_s9 = smov [#allocation2]   ;;  %s34_s28 = int_to_ptr.vmem [resolvable:$true] %s33_s28 }
   0x4   :  { %36 = dma.hbm_to_vmem [thread:$0]  %s32_s26, 64, %s34_s28, [#allocation6]  }
   0x5   :  { %s22_s10 = sshll.u32 %s610_s9, 4  ;;  %s44_s13 = sshll.u32 %s1062_s3, 4  ;;  %s23_s10 = int_to_ptr.vmem [resolvable:$true] %s22_s10  ;;  %s45_s13 = int_to_ptr.hbm [resolvable:$true] %s44_s13 }
   0x6   :  { %25 = dma.hbm_to_vmem [thread:$0]  %s21_s8, 64, %s23_s10, [#allocation3]  }
   0x7   :  { %s611_s1 = smov [#allocation7]  }
   0x8   :  { %s46_s14 = sshll.u32 %s611_s1, 4  ;;  %s47_s14 = int_to_ptr.vmem [resolvable:$true] %s46_s14 }
   0x9   :  { %49 = dma.hbm_to_vmem [thread:$0]  %s45_s13, 32, %s47_s14, [#allocation6]  }
   0xa   :  { %603 = dma.done.wait [#allocation3], 64  }
   0xb   :  { %604 = vsyncadd [#allocation3], 4294967232 }
   0xc   :  { %605 = dma.done.wait [#allocation6], 96  }
   0xd   :  { %606 = vsyncadd [#allocation6], 4294967200  ;;  %v101_v0 = vld [vmem:[%s1061_s2 + $0xf8] sm:$0xff]  ;;  %v99_v1 = vld [vmem:[%s1061_s2 + $0xe8] sm:$0xff]  ;;  %vm315_vm0 = vcmask 58368   ;;  %vm342_vm5 = vcmask 64512  }
   0xe   :  { %v133_v2 = vld [vmem:[%s1061_s2 + $0x1f8] sm:$0xff]  ;;  %186 = vmatpush.msra.mxu2 %v101_v0  ;;  %v131_v3 = vld [vmem:[%s1061_s2 + $0x1e8] sm:$0xff]  ;;  %v100_v4 = vld [vmem:[%s1061_s2 + $0xf0] sm:$0xff]  ;;  %vm389_vm6 = vcmask 1041408   ;;  %s612_s29 = smov [#allocation8]   ;;  %s480_s8 = sshll.u32 %s1066_s7, 4  ;;  %s481_s8 = int_to_ptr.hbm [resolvable:$true] %s480_s8 }
   0xf   :  { %206 = vmatpush.msra.mxu3 %v133_v2  ;;  %v97_v5 = vld [vmem:[%s1061_s2 + $0xd8] sm:$0xff]  ;;  %146 = vmatpush.msra.mxu0 %v100_v4  ;;  %v98_v7 = vld [vmem:[%s1061_s2 + $0xe0] sm:$0xff]  ;;  %v95_v8 = vld [vmem:[%s1061_s2 + $0xc8] sm:$0xff]  ;;  %s478_s30 = sshll.u32 %s612_s29, 4  ;;  %vm471_vm7 = vcmask 254976   ;;  %s479_s30 = int_to_ptr.vmem [resolvable:$true] %s478_s30 }
  0x10   :  { %v129_v6 = vld [vmem:[%s1061_s2 + $0x1d8] sm:$0xff]  ;;  %187 = vmatpush.msra.mxu2 %v99_v1  ;;  %v132_v9 = vld [vmem:[%s1061_s2 + $0x1f0] sm:$0xff]  ;;  %v127_v10 = vld [vmem:[%s1061_s2 + $0x1c8] sm:$0xff] }
  0x11   :  { %207 = vmatpush.msra.mxu3 %v131_v3  ;;  %147 = vmatpush.msra.mxu0 %v98_v7  ;;  %v96_v11 = vld [vmem:[%s1061_s2 + $0xd0] sm:$0xff]  ;;  %v130_v12 = vld [vmem:[%s1061_s2 + $0x1e0] sm:$0xff]  ;;  %v93_v15 = vld [vmem:[%s1061_s2 + $0xb8] sm:$0xff] }
  0x12   :  { %166 = vmatpush.msra.mxu1 %v132_v9  ;;  %188 = vmatpush.msra.mxu2 %v97_v5  ;;  %v94_v13 = vld [vmem:[%s1061_s2 + $0xc0] sm:$0xff]  ;;  %v128_v14 = vld [vmem:[%s1061_s2 + $0x1d0] sm:$0xff]  ;;  %v125_v16 = vld [vmem:[%s1061_s2 + $0x1b8] sm:$0xff] }
  0x13   :  { %208 = vmatpush.msra.mxu3 %v129_v6  ;;  %148 = vmatpush.msra.mxu0 %v96_v11  ;;  %v92_v17 = vld [vmem:[%s1061_s2 + $0xb0] sm:$0xff]  ;;  %v126_v18 = vld [vmem:[%s1061_s2 + $0x1c0] sm:$0xff]  ;;  %v91_v19 = vld [vmem:[%s1061_s2 + $0xa8] sm:$0xff] }
  0x14   :  { %167 = vmatpush.msra.mxu1 %v130_v12  ;;  %189 = vmatpush.msra.mxu2 %v95_v8  ;;  %v123_v20 = vld [vmem:[%s1061_s2 + $0x1a8] sm:$0xff]  ;;  %v90_v21 = vld [vmem:[%s1061_s2 + $0xa0] sm:$0xff]  ;;  %v124_v22 = vld [vmem:[%s1061_s2 + $0x1b0] sm:$0xff] }
  0x15   :  { %209 = vmatpush.msra.mxu3 %v127_v10  ;;  %149 = vmatpush.msra.mxu0 %v94_v13  ;;  %v89_v23 = vld [vmem:[%s1061_s2 + $0x98] sm:$0xff]  ;;  %v88_v25 = vld [vmem:[%s1061_s2 + $0x90] sm:$0xff]  ;;  %v122_v26 = vld [vmem:[%s1061_s2 + $0x1a0] sm:$0xff] }
  0x16   :  { %168 = vmatpush.msra.mxu1 %v128_v14  ;;  %190 = vmatpush.msra.mxu2 %v93_v15  ;;  %v121_v24 = vld [vmem:[%s1061_s2 + $0x198] sm:$0xff]  ;;  %v87_v27 = vld [vmem:[%s1061_s2 + $0x88] sm:$0xff]  ;;  %v86_v29 = vld [vmem:[%s1061_s2 + $0x80] sm:$0xff] }
  0x17   :  { %210 = vmatpush.msra.mxu3 %v125_v16  ;;  %150 = vmatpush.msra.mxu0 %v92_v17  ;;  %v119_v28 = vld [vmem:[%s1061_s2 + $0x188] sm:$0xff]  ;;  %v120_v30 = vld [vmem:[%s1061_s2 + $0x190] sm:$0xff]  ;;  %v85_v31 = vld [vmem:[%s1061_s2 + $0x78] sm:$0xff] }
  0x18   :  { %169 = vmatpush.msra.mxu1 %v126_v18  ;;  %191 = vmatpush.msra.mxu2 %v91_v19  ;;  %v117_v32 = vld [vmem:[%s1061_s2 + $0x178] sm:$0xff]  ;;  %v84_v33 = vld [vmem:[%s1061_s2 + $0x70] sm:$0xff]  ;;  %v118_v34 = vld [vmem:[%s1061_s2 + $0x180] sm:$0xff] }
  0x19   :  { %211 = vmatpush.msra.mxu3 %v123_v20  ;;  %151 = vmatpush.msra.mxu0 %v90_v21  ;;  %v83_v35 = vld [vmem:[%s1061_s2 + $0x68] sm:$0xff]  ;;  %v82_v37 = vld [vmem:[%s1061_s2 + $0x60] sm:$0xff]  ;;  %v116_v38 = vld [vmem:[%s1061_s2 + $0x170] sm:$0xff] }
  0x1a   :  { %170 = vmatpush.msra.mxu1 %v124_v22  ;;  %192 = vmatpush.msra.mxu2 %v89_v23  ;;  %v115_v36 = vld [vmem:[%s1061_s2 + $0x168] sm:$0xff]  ;;  %v81_v39 = vld [vmem:[%s1061_s2 + $0x58] sm:$0xff]  ;;  %v80_v42 = vld [vmem:[%s1061_s2 + $0x50] sm:$0xff] }
  0x1b   :  { %212 = vmatpush.msra.mxu3 %v121_v24  ;;  %152 = vmatpush.msra.mxu0 %v88_v25  ;;  %v113_v40 = vld [vmem:[%s1061_s2 + $0x158] sm:$0xff]  ;;  %v68_v41 = vld [vmem:[#allocation2] sm:$0xf]  ;;  %v114_v43 = vld [vmem:[%s1061_s2 + $0x160] sm:$0xff] }
  0x1c   :  { %171 = vmatpush.msra.mxu1 %v122_v26  ;;  %193 = vmatpush.msra.mxu2 %v87_v27  ;;  %141 = vst [vmem:[#allocation1] ss:$4 sm:$0xff] %v68_v41  ;;  %v79_v44 = vld [vmem:[%s1061_s2 + $0x48] sm:$0xff]  ;;  %v78_v46 = vld [vmem:[%s1061_s2 + $0x40] sm:$0xff]  ;;  %v112_v47 = vld [vmem:[%s1061_s2 + $0x150] sm:$0xff] }
  0x1d   :  { %213 = vmatpush.msra.mxu3 %v119_v28  ;;  %153 = vmatpush.msra.mxu0 %v86_v29  ;;  %v111_v45 = vld [vmem:[%s1061_s2 + $0x148] sm:$0xff]  ;;  %v77_v48 = vld [vmem:[%s1061_s2 + $0x38] sm:$0xff]  ;;  %v76_v51 = vld [vmem:[%s1061_s2 + $0x30] sm:$0xff] }
  0x1e   :  { %172 = vmatpush.msra.mxu1 %v120_v30  ;;  %194 = vmatpush.msra.mxu2 %v85_v31  ;;  %v109_v49 = vld [vmem:[%s1061_s2 + $0x138] sm:$0xff]  ;;  %v75_v50 = vld [vmem:[%s1061_s2 + $0x28] sm:$0xff]  ;;  %v110_v52 = vld [vmem:[%s1061_s2 + $0x140] sm:$0xff] }
  0x1f   :  { %214 = vmatpush.msra.mxu3 %v117_v32  ;;  %154 = vmatpush.msra.mxu0 %v84_v33  ;;  %v73_v53 = vld [vmem:[%s1061_s2 + $0x18] sm:$0xff]  ;;  %v107_v54 = vld [vmem:[%s1061_s2 + $0x128] sm:$0xff]  ;;  %v74_v57 = vld [vmem:[%s1061_s2 + $0x20] sm:$0xff] }
  0x20   :  { %173 = vmatpush.msra.mxu1 %v118_v34  ;;  %195 = vmatpush.msra.mxu2 %v83_v35  ;;  %v824_v55 = vld [vmem:[#allocation5] sm:$0xf]  ;;  %v105_v56 = vld [vmem:[%s1061_s2 + $0x118] sm:$0xff]  ;;  %v108_v58 = vld [vmem:[%s1061_s2 + $0x130] sm:$0xff] }
  0x21   :  { %215 = vmatpush.msra.mxu3 %v115_v36  ;;  %155 = vmatpush.msra.mxu0 %v82_v37  ;;  %v72_v61 = vld [vmem:[%s1061_s2 + $0x10] sm:$0xff]  ;;  %v106_v62 = vld [vmem:[%s1061_s2 + $0x120] sm:$0xff]  ;;  %v71_v63 = vld [vmem:[%s1061_s2 + $0x8] sm:$0xff] }
  0x22   :  { %174 = vmatpush.msra.mxu1 %v116_v38  ;;  %196 = vmatpush.msra.mxu2 %v81_v39  ;;  %v103_v0 = vld [vmem:[%s1061_s2 + $0x108] sm:$0xff]  ;;  %v70_v1 = vld [vmem:[%s1061_s2] sm:$0xff]  ;;  %v104_v2 = vld [vmem:[%s1061_s2 + $0x110] sm:$0xff] }
  0x23   :  { %216 = vmatpush.msra.mxu3 %v113_v40  ;;  %156 = vmatpush.msra.mxu0 %v80_v42  ;;  %v142_v59 = vld.sshfl [vmem:[#allocation1] sm:$0xff pattern:$0x73625140]  ;;  %v143_v60 = vld.sshfl [vmem:[#allocation1 + $0x8] sm:$0xff pattern:$0x73625140] }
  0x24   :  { %175 = vmatpush.msra.mxu1 %v114_v43  ;;  %197 = vmatpush.msra.mxu2 %v79_v44  ;;  %235 = vst [vmem:[#allocation1] ss:$4 sm:$0xff] %v824_v55  ;;  %v102_v3 = vld [vmem:[%s1061_s2 + $0x100] sm:$0xff]  ;;  %v257_v4 = vld [vmem:[%s1063_s4 + $0x78] sm:$0xff]  ;;  %v256_v6 = vld [vmem:[%s1063_s4 + $0x70] sm:$0xff] }
  0x25   :  { %217 = vmatpush.msra.mxu3 %v111_v45  ;;  %157 = vmatpush.msra.mxu0 %v78_v46  ;;  %v273_v5 = vld [vmem:[%s1063_s4 + $0xf8] sm:$0xff]  ;;  %v272_v7 = vld [vmem:[%s1063_s4 + $0xf0] sm:$0xff]  ;;  %v255_v8 = vld [vmem:[%s1063_s4 + $0x68] sm:$0xff] }
  0x26   :  { %176 = vmatpush.msra.mxu1 %v112_v47  ;;  %198 = vmatpush.msra.mxu2 %v77_v48  ;;  %v271_v9 = vld [vmem:[%s1063_s4 + $0xe8] sm:$0xff]  ;;  %v254_v10 = vld [vmem:[%s1063_s4 + $0x60] sm:$0xff]  ;;  %v253_v12 = vld [vmem:[%s1063_s4 + $0x58] sm:$0xff] }
  0x27   :  { %218 = vmatpush.msra.mxu3 %v109_v49  ;;  %158 = vmatpush.msra.mxu0 %v76_v51  ;;  %v270_v11 = vld [vmem:[%s1063_s4 + $0xe0] sm:$0xff]  ;;  %v269_v13 = vld [vmem:[%s1063_s4 + $0xd8] sm:$0xff]  ;;  %v252_v14 = vld [vmem:[%s1063_s4 + $0x50] sm:$0xff] }
  0x28   :  { %177 = vmatpush.msra.mxu1 %v110_v52  ;;  %199 = vmatpush.msra.mxu2 %v75_v50  ;;  %v268_v15 = vld [vmem:[%s1063_s4 + $0xd0] sm:$0xff]  ;;  %v251_v16 = vld [vmem:[%s1063_s4 + $0x48] sm:$0xff]  ;;  %v250_v18 = vld [vmem:[%s1063_s4 + $0x40] sm:$0xff] }
  0x29   :  { %219 = vmatpush.msra.mxu3 %v107_v54  ;;  %159 = vmatpush.msra.mxu0 %v74_v57  ;;  %v267_v17 = vld [vmem:[%s1063_s4 + $0xc8] sm:$0xff]  ;;  %v266_v19 = vld [vmem:[%s1063_s4 + $0xc0] sm:$0xff]  ;;  %v249_v20 = vld [vmem:[%s1063_s4 + $0x38] sm:$0xff] }
  0x2a   :  { %178 = vmatpush.msra.mxu1 %v108_v58  ;;  %200 = vmatpush.msra.mxu2 %v73_v53  ;;  %v265_v21 = vld [vmem:[%s1063_s4 + $0xb8] sm:$0xff]  ;;  %v248_v22 = vld [vmem:[%s1063_s4 + $0x30] sm:$0xff]  ;;  %v247_v24 = vld [vmem:[%s1063_s4 + $0x28] sm:$0xff] }
  0x2b   :  { %220 = vmatpush.msra.mxu3 %v105_v56  ;;  %160 = vmatpush.msra.mxu0 %v72_v61  ;;  %v264_v23 = vld [vmem:[%s1063_s4 + $0xb0] sm:$0xff]  ;;  %v263_v25 = vld [vmem:[%s1063_s4 + $0xa8] sm:$0xff]  ;;  %v246_v26 = vld [vmem:[%s1063_s4 + $0x20] sm:$0xff] }
  0x2c   :  { %179 = vmatpush.msra.mxu1 %v106_v62  ;;  %201 = vmatpush.msra.mxu2 %v71_v63  ;;  %v262_v27 = vld [vmem:[%s1063_s4 + $0xa0] sm:$0xff]  ;;  %v245_v28 = vld [vmem:[%s1063_s4 + $0x18] sm:$0xff]  ;;  %v244_v30 = vld [vmem:[%s1063_s4 + $0x10] sm:$0xff] }
  0x2d   :  { %221 = vmatpush.msra.mxu3 %v103_v0  ;;  %202 = vmatmul.f32.vlgmr.msra.gmra.mxu2 %v142_v59  ;;  %v261_v29 = vld [vmem:[%s1063_s4 + $0x98] sm:$0xff]  ;;  %v260_v31 = vld [vmem:[%s1063_s4 + $0x90] sm:$0xff]  ;;  %v243_v32 = vld [vmem:[%s1063_s4 + $0x8] sm:$0xff] }
  0x2e   :  { %222 = vmatmul.f32.vlgmr.msra.gmra.mxu3 %v143_v60  ;;  %161 = vmatpush.msra.mxu0 %v70_v1  ;;  %v259_v33 = vld [vmem:[%s1063_s4 + $0x88] sm:$0xff]  ;;  %v242_v34 = vld [vmem:[%s1063_s4] sm:$0xff]  ;;  %v134_v36 = vld [vmem:[#allocation7] sm:$0x3] }
  0x2f   :  { %180 = vmatpush.msra.mxu1 %v104_v2  ;;  %162 = vmatmul.f32.vlgmr.msra.gmra.mxu0 %v142_v59  ;;  %v258_v35 = vld [vmem:[%s1063_s4 + $0x80] sm:$0xff]  ;;  %v136_v37 = vperm.slane %v134_v36, 0  ;;  %v137_v40 = vperm.slane %v134_v36, 1  ;;  %v237_v57 = vld.sshfl [vmem:[#allocation1 + $0x8] sm:$0xff pattern:$0x73625140] }
  0x30   :  { %274 = vmatpush.msrb.mxu0 %v257_v4  ;;  %v236_v51 = vld.sshfl [vmem:[#allocation1] sm:$0xff pattern:$0x73625140] }
  0x31   :  { %181 = vmatpush.msra.mxu1 %v102_v3 }
  0x32   :  { %182 = vmatmul.f32.vlgmr.msra.gmra.mxu1 %v143_v60  ;;  %275 = vmatpush.msrb.mxu0 %v256_v6  ;;  %v341_v6 = vld [vmem:[%s1064_s5 + $0x8] sm:$0xff] }
  0x33   :  { %294 = vmatpush.msrb.mxu1 %v273_v5  ;;  %381 = vmatpush.msrb.mxu3 %v341_v6 }
  0x34   :  { %276 = vmatpush.msrb.mxu0 %v255_v8  ;;  %v408_v8 = vld [vmem:[%s1065_s6 + $0x78] sm:$0xff] }
  0x35   :  { %295 = vmatpush.msrb.mxu1 %v272_v7  ;;  %v340_v7 = vld [vmem:[%s1064_s5] sm:$0xff] }
  0x36   :  { %277 = vmatpush.msrb.mxu0 %v254_v10  ;;  %361 = vmatpush.msrb.mxu2 %v340_v7  ;;  %v407_v10 = vld [vmem:[%s1065_s6 + $0x70] sm:$0xff] }
  0x37   :  { %296 = vmatpush.msrb.mxu1 %v271_v9  ;;  %v424_v9 = vld [vmem:[%s1065_s6 + $0xf8] sm:$0xff] }
  0x38   :  { %278 = vmatpush.msrb.mxu0 %v253_v12  ;;  %431 = vmatpush.msra.mxu2 %v408_v8  ;;  %v406_v12 = vld [vmem:[%s1065_s6 + $0x68] sm:$0xff] }
  0x39   :  { %297 = vmatpush.msrb.mxu1 %v270_v11  ;;  %451 = vmatpush.msra.mxu3 %v424_v9  ;;  %v423_v11 = vld [vmem:[%s1065_s6 + $0xf0] sm:$0xff] }
  0x3a   :  { %279 = vmatpush.msrb.mxu0 %v252_v14  ;;  %432 = vmatpush.msra.mxu2 %v407_v10  ;;  %v405_v14 = vld [vmem:[%s1065_s6 + $0x60] sm:$0xff] }
  0x3b   :  { %298 = vmatpush.msrb.mxu1 %v269_v13  ;;  %v422_v13 = vld [vmem:[%s1065_s6 + $0xe8] sm:$0xff]  ;;  %452 = vmatpush.msra.mxu3 %v423_v11 }
  0x3c   :  { %280 = vmatpush.msrb.mxu0 %v251_v16  ;;  %433 = vmatpush.msra.mxu2 %v406_v12  ;;  %v404_v16 = vld [vmem:[%s1065_s6 + $0x58] sm:$0xff] }
  0x3d   :  { %299 = vmatpush.msrb.mxu1 %v268_v15  ;;  %v421_v15 = vld [vmem:[%s1065_s6 + $0xe0] sm:$0xff]  ;;  %453 = vmatpush.msra.mxu3 %v422_v13 }
  0x3e   :  { %281 = vmatpush.msrb.mxu0 %v250_v18  ;;  %434 = vmatpush.msra.mxu2 %v405_v14  ;;  %v403_v18 = vld [vmem:[%s1065_s6 + $0x50] sm:$0xff] }
  0x3f   :  { %300 = vmatpush.msrb.mxu1 %v267_v17  ;;  %v420_v17 = vld [vmem:[%s1065_s6 + $0xd8] sm:$0xff]  ;;  %454 = vmatpush.msra.mxu3 %v421_v15 }
  0x40   :  { %282 = vmatpush.msrb.mxu0 %v249_v20  ;;  %435 = vmatpush.msra.mxu2 %v404_v16  ;;  %v402_v20 = vld [vmem:[%s1065_s6 + $0x48] sm:$0xff] }
  0x41   :  { %301 = vmatpush.msrb.mxu1 %v266_v19  ;;  %v419_v19 = vld [vmem:[%s1065_s6 + $0xd0] sm:$0xff]  ;;  %455 = vmatpush.msra.mxu3 %v420_v17 }
  0x42   :  { %283 = vmatpush.msrb.mxu0 %v248_v22  ;;  %436 = vmatpush.msra.mxu2 %v403_v18 }
  0x43   :  { %302 = vmatpush.msrb.mxu1 %v265_v21  ;;  %v418_v21 = vld [vmem:[%s1065_s6 + $0xc8] sm:$0xff]  ;;  %456 = vmatpush.msra.mxu3 %v419_v19 }
  0x44   :  { %284 = vmatpush.msrb.mxu0 %v247_v24  ;;  %v417_v24 = vld [vmem:[%s1065_s6 + $0xc0] sm:$0xff]  ;;  %437 = vmatpush.msra.mxu2 %v402_v20 }
  0x45   :  { %303 = vmatpush.msrb.mxu1 %v264_v23  ;;  %v401_v23 = vld [vmem:[%s1065_s6 + $0x40] sm:$0xff]  ;;  %457 = vmatpush.msra.mxu3 %v418_v21 }
  0x46   :  { %285 = vmatpush.msrb.mxu0 %v246_v26  ;;  %v416_v26 = vld [vmem:[%s1065_s6 + $0xb8] sm:$0xff]  ;;  %438 = vmatpush.msra.mxu2 %v401_v23 }
  0x47   :  { %304 = vmatpush.msrb.mxu1 %v263_v25  ;;  %v400_v25 = vld [vmem:[%s1065_s6 + $0x38] sm:$0xff]  ;;  %458 = vmatpush.msra.mxu3 %v417_v24 }
  0x48   :  { %286 = vmatpush.msrb.mxu0 %v245_v28  ;;  %439 = vmatpush.msra.mxu2 %v400_v25 }
  0x49   :  { %305 = vmatpush.msrb.mxu1 %v262_v27  ;;  %459 = vmatpush.msra.mxu3 %v416_v26 }
  0x4a   :  { %287 = vmatpush.msrb.mxu0 %v244_v30 }
  0x4b   :  { %306 = vmatpush.msrb.mxu1 %v261_v29 }
  0x4c   :  { %288 = vmatpush.msrb.mxu0 %v243_v32 }
  0x4d   :  { %307 = vmatpush.msrb.mxu1 %v260_v31 }
  0x4e   :  { %289 = vmatpush.msrb.mxu0 %v242_v34 }
  0x4f   :  { %308 = vmatpush.msrb.mxu1 %v259_v33 }
  0x51   :  { %309 = vmatpush.msrb.mxu1 %v258_v35 }
  0xac   :  { %v163_v38 = vpop.f32.mrf.mxu0 }
  0xad   :  { %v164_v39 = vadd.f32 %v163_v38, %v136_v37  ;;  %v399_v38 = vld [vmem:[%s1065_s6 + $0x30] sm:$0xff] }
  0xae   :  { %440 = vmatpush.msra.mxu2 %v399_v38 }
  0xaf   :  { %v183_v41 = vpop.f32.mrf.mxu1 }
  0xb0   :  { %v184_v42 = vadd.f32 %v183_v41, %v164_v39  ;;  %v203_v43 = vpop.f32.mrf.mxu2  ;;  %v415_v39 = vld [vmem:[%s1065_s6 + $0xb0] sm:$0xff]  ;;  %v414_v41 = vld [vmem:[%s1065_s6 + $0xa8] sm:$0xff] }
  0xb1   :  { %v223_v44 = vpop.f32.mrf.mxu3  ;;  %v204_v45 = vadd.f32 %v203_v43, %v137_v40  ;;  %460 = vmatpush.msra.mxu3 %v415_v39  ;;  %v398_v40 = vld [vmem:[%s1065_s6 + $0x28] sm:$0xff]  ;;  %v413_v43 = vld [vmem:[%s1065_s6 + $0xa0] sm:$0xff] }
  0xb2   :  { %v226_v46 = vmul.f32 0.5, %v184_v42  ;;  %441 = vmatpush.msra.mxu2 %v398_v40  ;;  %v397_v42 = vld [vmem:[%s1065_s6 + $0x20] sm:$0xff] }
  0xb3   :  { %v224_v47 = vadd.f32 %v223_v44, %v204_v45  ;;  %461 = vmatpush.msra.mxu3 %v414_v41  ;;  %v396_v44 = vld [vmem:[%s1065_s6 + $0x18] sm:$0xff] }
  0xb4   :  { %497 = vtanh.f32 %v226_v46  ;;  %442 = vmatpush.msra.mxu2 %v397_v42  ;;  %v412_v45 = vld [vmem:[%s1065_s6 + $0x98] sm:$0xff]  ;;  %v395_v46 = vld [vmem:[%s1065_s6 + $0x10] sm:$0xff] }
  0xb5   :  { %v227_v48 = vmul.f32 0.5, %v224_v47  ;;  %462 = vmatpush.msra.mxu3 %v413_v43  ;;  %v411_v47 = vld [vmem:[%s1065_s6 + $0x90] sm:$0xff] }
  0xb6   :  { %443 = vmatpush.msra.mxu2 %v396_v44 }
  0xb7   :  { %499 = vtanh.f32 %v227_v48  ;;  %463 = vmatpush.msra.mxu3 %v412_v45  ;;  %v394_v48 = vld [vmem:[%s1065_s6 + $0x8] sm:$0xff] }
  0xb8   :  { %444 = vmatpush.msra.mxu2 %v395_v46 }
  0xb9   :  { %464 = vmatpush.msra.mxu3 %v411_v47 }
  0xba   :  { %v498_v49 = vpop.eup %497  ;;  %445 = vmatpush.msra.mxu2 %v394_v48 }
  0xbb   :  { %v230_v50 = vadd.f32 1.0, %v498_v49  ;;  %v410_v49 = vld [vmem:[%s1065_s6 + $0x88] sm:$0xff] }
  0xbc   :  { %465 = vmatpush.msra.mxu3 %v410_v49 }
  0xbd   :  { %v232_v52 = vmul.f32 0.5, %v230_v50  ;;  %v500_v53 = vpop.eup %499  ;;  %v393_v50 = vld [vmem:[%s1065_s6] sm:$0xff] }
  0xbe   :  { %v231_v54 = vadd.f32 1.0, %v500_v53  ;;  %446 = vmatpush.msra.mxu2 %v393_v50 }
  0xbf   :  { %v240_v56 = vmul.f32 %v236_v51, %v232_v52  ;;  %v409_v51 = vld [vmem:[%s1065_s6 + $0x80] sm:$0xff] }
  0xc0   :  { %v233_v58 = vmul.f32 0.5, %v231_v54  ;;  %466 = vmatpush.msra.mxu3 %v409_v51 }
  0xc1   :  { %290 = vmatmul.f32.vlgmr.msrb.gmra.mxu0 %v240_v56 }
  0xc2   :  { %v241_v59 = vmul.f32 %v237_v57, %v233_v58 }
  0xc4   :  { %310 = vmatmul.f32.vlgmr.msrb.gmra.mxu1 %v241_v59 }
 0x13e   :  { %v291_v60 = vpop.f32.mrf.mxu0 }
 0x141   :  { %v311_v61 = vpop.f32.mrf.mxu1 }
 0x142   :  { %v312_v62 = vadd.f32 %v311_v61, %v291_v60 }
 0x144   :  { %501 = vtanh.f32 %v312_v62 }
 0x14a   :  { %v502_v63 = vpop.eup %501 }
 0x14b   :  { %v316_v0 = vsel %vm315_vm0, %v502_v63, -inf }
 0x14c   :  { %317 = vmax.xlane.f32.xlu0 %v316_v0 }
 0x1bf   :  { %v318_v1 = vpop.xlane.xlu0 %317 }
 0x1c0   :  { %v319_v2 = vsub.f32 %v502_v63, %v318_v1 }
 0x1c2   :  { %v320_v3 = vmul.f32 1.442695, %v319_v2 }
 0x1c4   :  { %503 = vpow2.f32 %v320_v3 }
 0x1ca   :  { %v504_v4 = vpop.eup %503 }
 0x1cb   :  { %v322_v5 = vsel %vm315_vm0, %v504_v4, 0.0 }
 0x1cc   :  { %323 = vadd.xlane.f32.xlu0 %v322_v5 }
 0x23f   :  { %v324_v22 = vpop.xlane.xlu0 %323 }
 0x240   :  { %505 = vrcp.f32 %v324_v22  ;;  %v336_v30 = vand.u32 2147483648, %v324_v22  ;;  %v334_v32 = vand.u32 2147483647, %v324_v22  ;;  %vm330_vm2 = vweird.f32 %v324_v22 }
 0x242   :  { %v337_v34 = vor.u32 1.1754944e-38, %v336_v30  ;;  %vm335_vm4 = vcmp.eq.f32.partialorder %v334_v32, 8.507059e+37 }
 0x246   :  { %v506_v27 = vpop.eup %505 }
 0x247   :  { %v326_v28 = vmul.f32 %v506_v27, %v324_v22  ;;  %vm331_vm1 = vweird.f32 %v506_v27 }
 0x248   :  { %vm332_vm3 = vmor %vm330_vm2, %vm331_vm1 }
 0x249   :  { %v327_v29 = vsub.f32 1.0, %v326_v28 }
 0x24b   :  { %v328_v31 = vmul.f32 %v506_v27, %v327_v29 }
 0x24d   :  { %v329_v33 = vadd.f32 %v506_v27, %v328_v31 }
 0x24f   :  { %v333_v35 = vsel %vm332_vm3, %v506_v27, %v329_v33 }
 0x250   :  { %v338_v36 = vsel %vm335_vm4, %v337_v34, %v333_v35 }
 0x251   :  { %v339_v37 = vmul.f32 %v504_v4, %v338_v36 }
 0x253   :  { %491 = vmatmul.msk.f32.vlgmr.msrb.gmra.mxu2 %vm342_vm5, %v339_v37  ;;  %492 = vmatmul.msk.f32.vlgmr.msrb.gmra.mxu3 %vm342_vm5, %v339_v37 }
 0x2d6   :  { %v383_v52 = vpop.f32.mrf.mxu3  ;;  %v363_v54 = vpop.f32.mrf.mxu2 }
 0x2d7   :  { %v388_v53 = vrot.slane %v383_v52, 6 }
 0x2d9   :  { %v390_v56 = vsel %vm389_vm6, %v363_v54, %v388_v53 }
 0x2da   :  { %v392_v57 = vmul.f32 %v390_v56, %v824_v55 }
 0x2dc   :  { %426 = vst [vmem:[#allocation1] ss:$4 sm:$0xff] %v392_v57 }
 0x2e3   :  { %v427_v58 = vld.sshfl [vmem:[#allocation1] sm:$0xff pattern:$0x73625140]  ;;  %v428_v59 = vld.sshfl [vmem:[#allocation1 + $0x8] sm:$0xff pattern:$0x73625140] }
 0x2e4   :  { %447 = vmatmul.f32.vlgmr.msra.gmra.mxu2 %v427_v58  ;;  %467 = vmatmul.f32.vlgmr.msra.gmra.mxu3 %v428_v59 }
 0x367   :  { %v448_v60 = vpop.f32.mrf.mxu2  ;;  %v468_v61 = vpop.f32.mrf.mxu3 }
 0x368   :  { %v469_v62 = vadd.f32 %v468_v61, %v448_v60 }
 0x36a   :  { %472 = vst.msk [vmem:[#allocation8] sm:$0x3] %vm471_vm7, %v469_v62 }
 0x36b   :  { %483 = dma.vmem_to_hbm [thread:$0]  %s479_s30, 32, %s481_s8, [#allocation4]  }
 0x36c   :  { %607 = dma.done.wait [#allocation4], 32  }
 0x36d   :  { %608 = vsyncadd [#allocation4], 4294967264 }
 0x36e   :  { %488 = vsyncpa [#allocation3], 1 }
 0x36f   :  { %489 = vsyncpa [#allocation6], 1 }
 0x370   :  { %490 = vsyncpa [#allocation4], 1 }

</bundles_post_ra>
